<compile_context>
chip_gen: v5e
topology: v5e:2x2
jax: 0.10.0
libtpu: 0.0.40
codegen_flags: <defaults>
</compile_context>

<pallas_src>
import functools

import jax
import jax.numpy as jnp
from jax import lax
from jax.experimental import pallas as pl
from jax.experimental.pallas import tpu as pltpu

INPUT_SIZE = 32   # fixed by nn.LSTM(32, hidden_size1)
OUT_SIZE = 2      # fixed by nn.Linear(hidden_size1, 2)
OUT_PAD = 128     # fc output padded to a full lane group (unmasked vst)


def _mini_lstm_kernel(x_ref,      # (T*Bp, 32)     time-major, batch-padded inputs
                      wih_ref,    # (32, 4H)       fused W_ih^T (gate cols i,f,g,o)
                      whh_ref,    # (H, 4H)        fused W_hh^T (gate cols i,f,g,o)
                      b_ref,      # (1, 4H)        b_ih + b_hh
                      wfc_ref,    # (H, OUT_PAD)   W_fc^T zero-padded to 128 lanes
                      bfc_ref,    # (1, OUT_PAD)   b_fc zero-padded
                      h0_ref,     # (Bp, H)
                      c0_ref,     # (Bp, H)
                      y_ref,      # (T*Bp, OUT_PAD) output
                      h_all_ref): # (T*Bp, H)      VMEM scratch for per-step h_t
    Bp, H = h0_ref.shape
    T = x_ref.shape[0] // Bp
    G = 4 * H

    # ---- hoisted input projection: ONE batched MXU matmul over all T*Bp rows,
    # ---- bias folded in.  Result is lane-dense (T*Bp, 4H).
    gx = (jnp.dot(x_ref[...], wih_ref[...], preferred_element_type=jnp.float32)
          + b_ref[...])

    # Loop-invariant fused recurrent weight tile.
    w_hh = whh_ref[...]

    # Lane mask selecting the 'g' gate block (tanh) vs. the sigmoid gates.
    lane = lax.broadcasted_iota(jnp.int32, (Bp, G), 1)
    is_g = jnp.logical_and(lane >= 2 * H, lane < 3 * H)

    # ---- recurrence: h/c register-resident; fully unrolled (T static, small).
    # ---- One (Bp,H)@(H,4H) matmul + 2 full-width EUP passes per step.
    h = h0_ref[...]
    c = c0_ref[...]
    for t in range(T):
        z = gx[t * Bp:(t + 1) * Bp, :] + jnp.dot(
            h, w_hh, preferred_element_type=jnp.float32)        # (Bp, 4H)
        act = jnp.where(is_g, jnp.tanh(z), jax.nn.sigmoid(z))   # full-width EUP
        i = act[:, 0 * H:1 * H]
        f = act[:, 1 * H:2 * H]
        g = act[:, 2 * H:3 * H]
        o = act[:, 3 * H:4 * H]
        c = f * c + i * g
        h = o * jnp.tanh(c)
        # Store h_t as it retires (overlaps with next step's matmul/EUP work).
        h_all_ref[t * Bp:(t + 1) * Bp, :] = h

    # ---- fc + ReLU: one batched matmul, one full-vreg (128-lane) store.
    y = (jnp.dot(h_all_ref[...], wfc_ref[...],
                 preferred_element_type=jnp.float32)
         + bfc_ref[...])                                        # (T*Bp, OUT_PAD)
    y_ref[...] = jnp.maximum(y, 0.0)


def pack_params(params, hidden_size):
    """One-time weight re-layout (hoisted out of the hot forward path)."""
    H = hidden_size
    w_ih, w_hh, b_ih, b_hh, w_fc, b_fc = params
    wih_t = jnp.transpose(w_ih).astype(jnp.float32)             # (32, 4H)
    whh_t = jnp.transpose(w_hh).astype(jnp.float32)             # (H, 4H)
    b = (b_ih + b_hh).astype(jnp.float32).reshape(1, 4 * H)     # (1, 4H)
    wfc_t = jnp.zeros((H, OUT_PAD), jnp.float32).at[:, :OUT_SIZE].set(
        jnp.transpose(w_fc).astype(jnp.float32))                # (H, 128)
    bfc = jnp.zeros((1, OUT_PAD), jnp.float32).at[:, :OUT_SIZE].set(
        b_fc.astype(jnp.float32))                               # (1, 128)
    return wih_t, whh_t, b, wfc_t, bfc


@functools.partial(jax.jit, static_argnames=("hidden_size",))
def mini_lstm_forward(x, hidden, packed, hidden_size):
    """x: (B, 32, T) float32;  hidden: (h0, c0) each (1, B, H);
    packed: output of pack_params()."""
    B = x.shape[0]
    T = x.shape[2]
    H = hidden_size
    Bp = ((B + 7) // 8) * 8                    # pad batch to 8-sublane multiple

    wih_t, whh_t, b, wfc_t, bfc = packed

    # transpose(1, 2): (B, 32, T) -> (B, T, 32); time-major + batch pad + flatten.
    x_tm = jnp.transpose(x, (2, 0, 1)).astype(jnp.float32)      # (T, B, 32)
    x_tm = jnp.pad(x_tm, ((0, 0), (0, Bp - B), (0, 0)))         # (T, Bp, 32)
    x_flat = x_tm.reshape(T * Bp, INPUT_SIZE)

    h0 = jnp.pad(hidden[0].reshape(B, H).astype(jnp.float32),
                 ((0, Bp - B), (0, 0)))                         # (Bp, H)
    c0 = jnp.pad(hidden[1].reshape(B, H).astype(jnp.float32),
                 ((0, Bp - B), (0, 0)))                         # (Bp, H)

    vmem = pl.BlockSpec(memory_space=pltpu.MemorySpace.VMEM)
    y_flat = pl.pallas_call(
        _mini_lstm_kernel,
        out_shape=jax.ShapeDtypeStruct((T * Bp, OUT_PAD), jnp.float32),
        in_specs=[vmem] * 8,
        out_specs=vmem,
        scratch_shapes=[pltpu.VMEM((T * Bp, H), jnp.float32)],
    )(x_flat, wih_t, whh_t, b, wfc_t, bfc, h0, c0)

    # back to batch_first, dropping batch padding and fc lane padding: (B, T, 2)
    y = y_flat.reshape(T, Bp, OUT_PAD)[:, :B, :OUT_SIZE]
    return jnp.transpose(y, (1, 0, 2))


def init_params(key, hidden_size):
    """Deterministic synthetic parameters with PyTorch-like shapes/scale."""
    H = hidden_size
    k = 1.0 / jnp.sqrt(jnp.float32(H))
    keys = jax.random.split(key, 6)
    w_ih = jax.random.uniform(keys[0], (4 * H, INPUT_SIZE), jnp.float32, -k, k)
    w_hh = jax.random.uniform(keys[1], (4 * H, H), jnp.float32, -k, k)
    b_ih = jax.random.uniform(keys[2], (4 * H,), jnp.float32, -k, k)
    b_hh = jax.random.uniform(keys[3], (4 * H,), jnp.float32, -k, k)
    w_fc = jax.random.uniform(keys[4], (OUT_SIZE, H), jnp.float32, -k, k)
    b_fc = jax.random.uniform(keys[5], (OUT_SIZE,), jnp.float32, -k, k)
    return (w_ih, w_hh, b_ih, b_hh, w_fc, b_fc)


def reference_forward(x, hidden, params, hidden_size):
    """Pure-JAX reference mirroring torch.nn.LSTM + Linear + ReLU."""
    H = hidden_size
    w_ih, w_hh, b_ih, b_hh, w_fc, b_fc = params
    x_bt = jnp.transpose(x, (0, 2, 1))          # (B, T, 32)
    h = hidden[0][0]
    c = hidden[1][0]

    def step(carry, xt):
        h, c = carry
        gates = xt @ w_ih.T + b_ih + h @ w_hh.T + b_hh
        i = jax.nn.sigmoid(gates[:, 0 * H:1 * H])
        f = jax.nn.sigmoid(gates[:, 1 * H:2 * H])
        g = jnp.tanh(gates[:, 2 * H:3 * H])
        o = jax.nn.sigmoid(gates[:, 3 * H:4 * H])
        c = f * c + i * g
        h = o * jnp.tanh(c)
        return (h, c), h

    (_, _), hs = lax.scan(step, (h, c), jnp.transpose(x_bt, (1, 0, 2)))
    hs = jnp.transpose(hs, (1, 0, 2))           # (B, T, H)
    y = hs @ w_fc.T + b_fc
    return jnp.maximum(y, 0.0)


if __name__ == "__main__":
    B = 2            # batch_size
    H = 32           # hidden_size1
    T = 8            # sequence length

    key = jax.random.PRNGKey(0)
    kx, kp = jax.random.split(key)
    x = jax.random.normal(kx, (B, INPUT_SIZE, T), dtype=jnp.float32)
    params = init_params(kp, H)

    # One-time weight packing (kept out of the jitted forward path).
    packed = jax.tree_util.tree_map(jax.block_until_ready,
                                    pack_params(params, H))

    # initHidden(): zeros of shape (1, B, H)
    hidden = (jnp.zeros((1, B, H), jnp.float32),
              jnp.zeros((1, B, H), jnp.float32))

    out = mini_lstm_forward(x, hidden, packed, H)
    out = jax.block_until_ready(out)

    ref = reference_forward(x, hidden, params, H)
    assert out.shape == (B, T, OUT_SIZE)
    assert jnp.allclose(out, ref, atol=1e-4, rtol=1e-4), "mismatch vs reference"

    print("KERNEL_OK")
</pallas_src>

<mosaic_0001>
module attributes {stable_mosaic.version = 11 : i64} {
  func.func @_mini_lstm_kernel(%arg0: memref<64x32xf32, #tpu.memory_space<vmem>>, %arg1: memref<32x128xf32, #tpu.memory_space<vmem>>, %arg2: memref<32x128xf32, #tpu.memory_space<vmem>>, %arg3: memref<1x128xf32, #tpu.memory_space<vmem>>, %arg4: memref<32x128xf32, #tpu.memory_space<vmem>>, %arg5: memref<1x128xf32, #tpu.memory_space<vmem>>, %arg6: memref<8x32xf32, #tpu.memory_space<vmem>>, %arg7: memref<8x32xf32, #tpu.memory_space<vmem>>, %arg8: memref<64x128xf32, #tpu.memory_space<vmem>>, %arg9: memref<64x32xf32, #tpu.memory_space<vmem>>) attributes {dimension_semantics = [], scalar_prefetch = 0 : i64, scratch_operands = 1 : i64, tpu.core_type = #tpu.core_type<tc>} {
    %c0 = arith.constant 0 : index
    %c0_0 = arith.constant 0 : index
    %0 = vector.load %arg0[%c0, %c0_0] : memref<64x32xf32, #tpu.memory_space<vmem>>, vector<64x32xf32>
    %c0_1 = arith.constant 0 : index
    %c0_2 = arith.constant 0 : index
    %1 = vector.load %arg1[%c0_1, %c0_2] : memref<32x128xf32, #tpu.memory_space<vmem>>, vector<32x128xf32>
    %cst = arith.constant dense<0.000000e+00> : vector<64x128xf32>
    %2 = tpu.matmul %0, %1, %cst {dimension_numbers = #tpu.dot_dimension_numbers<[1], [0], [0], [1], [0, 0, 1, 1], [], []>} : vector<64x32xf32>, vector<32x128xf32>, vector<64x128xf32> -> vector<64x128xf32>
    %c0_3 = arith.constant 0 : index
    %c0_4 = arith.constant 0 : index
    %3 = vector.load %arg3[%c0_3, %c0_4] : memref<1x128xf32, #tpu.memory_space<vmem>>, vector<1x128xf32>
    %4 = vector.broadcast %3 : vector<1x128xf32> to vector<64x128xf32>
    %5 = arith.addf %2, %4 : vector<64x128xf32>
    %c0_5 = arith.constant 0 : index
    %c0_6 = arith.constant 0 : index
    %6 = vector.load %arg2[%c0_5, %c0_6] : memref<32x128xf32, #tpu.memory_space<vmem>>, vector<32x128xf32>
    %7 = tpu.iota {dimensions = array<i32: 1>} : vector<8x128xi32>
    %c64_i32 = arith.constant 64 : i32
    %8 = vector.broadcast %c64_i32 : i32 to vector<8x128xi32>
    %9 = arith.cmpi sge, %7, %8 : vector<8x128xi32>
    %c96_i32 = arith.constant 96 : i32
    %10 = vector.broadcast %c96_i32 : i32 to vector<8x128xi32>
    %11 = arith.cmpi slt, %7, %10 : vector<8x128xi32>
    %12 = arith.andi %9, %11 : vector<8x128xi1>
    %c0_7 = arith.constant 0 : index
    %c0_8 = arith.constant 0 : index
    %13 = vector.load %arg6[%c0_7, %c0_8] : memref<8x32xf32, #tpu.memory_space<vmem>>, vector<8x32xf32>
    %c0_9 = arith.constant 0 : index
    %c0_10 = arith.constant 0 : index
    %14 = vector.load %arg7[%c0_9, %c0_10] : memref<8x32xf32, #tpu.memory_space<vmem>>, vector<8x32xf32>
    %15 = vector.extract_strided_slice %5 {offsets = [0, 0], sizes = [8, 128], strides = [1, 1]} : vector<64x128xf32> to vector<8x128xf32>
    %cst_11 = arith.constant dense<0.000000e+00> : vector<8x128xf32>
    %16 = tpu.matmul %13, %6, %cst_11 {dimension_numbers = #tpu.dot_dimension_numbers<[1], [0], [0], [1], [0, 0, 1, 1], [], []>} : vector<8x32xf32>, vector<32x128xf32>, vector<8x128xf32> -> vector<8x128xf32>
    %17 = arith.addf %15, %16 : vector<8x128xf32>
    %18 = math.tanh %17 : vector<8x128xf32>
    %19 = arith.negf %17 : vector<8x128xf32>
    %20 = math.exp %19 : vector<8x128xf32>
    %cst_12 = arith.constant 1.000000e+00 : f32
    %21 = vector.broadcast %cst_12 : f32 to vector<8x128xf32>
    %22 = arith.addf %21, %20 : vector<8x128xf32>
    %23 = arith.divf %21, %22 : vector<8x128xf32>
    %24 = arith.select %12, %18, %23 : vector<8x128xi1>, vector<8x128xf32>
    %25 = vector.extract_strided_slice %24 {offsets = [0, 0], sizes = [8, 32], strides = [1, 1]} : vector<8x128xf32> to vector<8x32xf32>
    %26 = vector.extract_strided_slice %24 {offsets = [0, 32], sizes = [8, 32], strides = [1, 1]} : vector<8x128xf32> to vector<8x32xf32>
    %27 = vector.extract_strided_slice %24 {offsets = [0, 64], sizes = [8, 32], strides = [1, 1]} : vector<8x128xf32> to vector<8x32xf32>
    %28 = vector.extract_strided_slice %24 {offsets = [0, 96], sizes = [8, 32], strides = [1, 1]} : vector<8x128xf32> to vector<8x32xf32>
    %29 = arith.mulf %26, %14 : vector<8x32xf32>
    %30 = arith.mulf %25, %27 : vector<8x32xf32>
    %31 = arith.addf %29, %30 : vector<8x32xf32>
    %32 = math.tanh %31 : vector<8x32xf32>
    %33 = arith.mulf %28, %32 : vector<8x32xf32>
    %c0_13 = arith.constant 0 : index
    %c0_14 = arith.constant 0 : index
    %34 = vector.load %arg9[%c0_13, %c0_14] : memref<64x32xf32, #tpu.memory_space<vmem>>, vector<8x32xf32>
    tpu.vector_store %arg9[%c0_13, %c0_14], %33 {strides = array<i32>} : memref<64x32xf32, #tpu.memory_space<vmem>>, vector<8x32xf32>,
    %35 = vector.extract_strided_slice %5 {offsets = [8, 0], sizes = [8, 128], strides = [1, 1]} : vector<64x128xf32> to vector<8x128xf32>
    %cst_15 = arith.constant dense<0.000000e+00> : vector<8x128xf32>
    %36 = tpu.matmul %33, %6, %cst_15 {dimension_numbers = #tpu.dot_dimension_numbers<[1], [0], [0], [1], [0, 0, 1, 1], [], []>} : vector<8x32xf32>, vector<32x128xf32>, vector<8x128xf32> -> vector<8x128xf32>
    %37 = arith.addf %35, %36 : vector<8x128xf32>
    %38 = math.tanh %37 : vector<8x128xf32>
    %39 = arith.negf %37 : vector<8x128xf32>
    %40 = math.exp %39 : vector<8x128xf32>
    %cst_16 = arith.constant 1.000000e+00 : f32
    %41 = vector.broadcast %cst_16 : f32 to vector<8x128xf32>
    %42 = arith.addf %41, %40 : vector<8x128xf32>
    %43 = arith.divf %41, %42 : vector<8x128xf32>
    %44 = arith.select %12, %38, %43 : vector<8x128xi1>, vector<8x128xf32>
    %45 = vector.extract_strided_slice %44 {offsets = [0, 0], sizes = [8, 32], strides = [1, 1]} : vector<8x128xf32> to vector<8x32xf32>
    %46 = vector.extract_strided_slice %44 {offsets = [0, 32], sizes = [8, 32], strides = [1, 1]} : vector<8x128xf32> to vector<8x32xf32>
    %47 = vector.extract_strided_slice %44 {offsets = [0, 64], sizes = [8, 32], strides = [1, 1]} : vector<8x128xf32> to vector<8x32xf32>
    %48 = vector.extract_strided_slice %44 {offsets = [0, 96], sizes = [8, 32], strides = [1, 1]} : vector<8x128xf32> to vector<8x32xf32>
    %49 = arith.mulf %46, %31 : vector<8x32xf32>
    %50 = arith.mulf %45, %47 : vector<8x32xf32>
    %51 = arith.addf %49, %50 : vector<8x32xf32>
    %52 = math.tanh %51 : vector<8x32xf32>
    %53 = arith.mulf %48, %52 : vector<8x32xf32>
    %c8 = arith.constant 8 : index
    %c0_17 = arith.constant 0 : index
    %54 = vector.load %arg9[%c8, %c0_17] : memref<64x32xf32, #tpu.memory_space<vmem>>, vector<8x32xf32>
    tpu.vector_store %arg9[%c8, %c0_17], %53 {strides = array<i32>} : memref<64x32xf32, #tpu.memory_space<vmem>>, vector<8x32xf32>,
    %55 = vector.extract_strided_slice %5 {offsets = [16, 0], sizes = [8, 128], strides = [1, 1]} : vector<64x128xf32> to vector<8x128xf32>
    %cst_18 = arith.constant dense<0.000000e+00> : vector<8x128xf32>
    %56 = tpu.matmul %53, %6, %cst_18 {dimension_numbers = #tpu.dot_dimension_numbers<[1], [0], [0], [1], [0, 0, 1, 1], [], []>} : vector<8x32xf32>, vector<32x128xf32>, vector<8x128xf32> -> vector<8x128xf32>
    %57 = arith.addf %55, %56 : vector<8x128xf32>
    %58 = math.tanh %57 : vector<8x128xf32>
    %59 = arith.negf %57 : vector<8x128xf32>
    %60 = math.exp %59 : vector<8x128xf32>
    %cst_19 = arith.constant 1.000000e+00 : f32
    %61 = vector.broadcast %cst_19 : f32 to vector<8x128xf32>
    %62 = arith.addf %61, %60 : vector<8x128xf32>
    %63 = arith.divf %61, %62 : vector<8x128xf32>
    %64 = arith.select %12, %58, %63 : vector<8x128xi1>, vector<8x128xf32>
    %65 = vector.extract_strided_slice %64 {offsets = [0, 0], sizes = [8, 32], strides = [1, 1]} : vector<8x128xf32> to vector<8x32xf32>
    %66 = vector.extract_strided_slice %64 {offsets = [0, 32], sizes = [8, 32], strides = [1, 1]} : vector<8x128xf32> to vector<8x32xf32>
    %67 = vector.extract_strided_slice %64 {offsets = [0, 64], sizes = [8, 32], strides = [1, 1]} : vector<8x128xf32> to vector<8x32xf32>
    %68 = vector.extract_strided_slice %64 {offsets = [0, 96], sizes = [8, 32], strides = [1, 1]} : vector<8x128xf32> to vector<8x32xf32>
    %69 = arith.mulf %66, %51 : vector<8x32xf32>
    %70 = arith.mulf %65, %67 : vector<8x32xf32>
    %71 = arith.addf %69, %70 : vector<8x32xf32>
    %72 = math.tanh %71 : vector<8x32xf32>
    %73 = arith.mulf %68, %72 : vector<8x32xf32>
    %c16 = arith.constant 16 : index
    %c0_20 = arith.constant 0 : index
    %74 = vector.load %arg9[%c16, %c0_20] : memref<64x32xf32, #tpu.memory_space<vmem>>, vector<8x32xf32>
    tpu.vector_store %arg9[%c16, %c0_20], %73 {strides = array<i32>} : memref<64x32xf32, #tpu.memory_space<vmem>>, vector<8x32xf32>,
    %75 = vector.extract_strided_slice %5 {offsets = [24, 0], sizes = [8, 128], strides = [1, 1]} : vector<64x128xf32> to vector<8x128xf32>
    %cst_21 = arith.constant dense<0.000000e+00> : vector<8x128xf32>
    %76 = tpu.matmul %73, %6, %cst_21 {dimension_numbers = #tpu.dot_dimension_numbers<[1], [0], [0], [1], [0, 0, 1, 1], [], []>} : vector<8x32xf32>, vector<32x128xf32>, vector<8x128xf32> -> vector<8x128xf32>
    %77 = arith.addf %75, %76 : vector<8x128xf32>
    %78 = math.tanh %77 : vector<8x128xf32>
    %79 = arith.negf %77 : vector<8x128xf32>
    %80 = math.exp %79 : vector<8x128xf32>
    %cst_22 = arith.constant 1.000000e+00 : f32
    %81 = vector.broadcast %cst_22 : f32 to vector<8x128xf32>
    %82 = arith.addf %81, %80 : vector<8x128xf32>
    %83 = arith.divf %81, %82 : vector<8x128xf32>
    %84 = arith.select %12, %78, %83 : vector<8x128xi1>, vector<8x128xf32>
    %85 = vector.extract_strided_slice %84 {offsets = [0, 0], sizes = [8, 32], strides = [1, 1]} : vector<8x128xf32> to vector<8x32xf32>
    %86 = vector.extract_strided_slice %84 {offsets = [0, 32], sizes = [8, 32], strides = [1, 1]} : vector<8x128xf32> to vector<8x32xf32>
    %87 = vector.extract_strided_slice %84 {offsets = [0, 64], sizes = [8, 32], strides = [1, 1]} : vector<8x128xf32> to vector<8x32xf32>
    %88 = vector.extract_strided_slice %84 {offsets = [0, 96], sizes = [8, 32], strides = [1, 1]} : vector<8x128xf32> to vector<8x32xf32>
    %89 = arith.mulf %86, %71 : vector<8x32xf32>
    %90 = arith.mulf %85, %87 : vector<8x32xf32>
    %91 = arith.addf %89, %90 : vector<8x32xf32>
    %92 = math.tanh %91 : vector<8x32xf32>
    %93 = arith.mulf %88, %92 : vector<8x32xf32>
    %c24 = arith.constant 24 : index
    %c0_23 = arith.constant 0 : index
    %94 = vector.load %arg9[%c24, %c0_23] : memref<64x32xf32, #tpu.memory_space<vmem>>, vector<8x32xf32>
    tpu.vector_store %arg9[%c24, %c0_23], %93 {strides = array<i32>} : memref<64x32xf32, #tpu.memory_space<vmem>>, vector<8x32xf32>,
    %95 = vector.extract_strided_slice %5 {offsets = [32, 0], sizes = [8, 128], strides = [1, 1]} : vector<64x128xf32> to vector<8x128xf32>
    %cst_24 = arith.constant dense<0.000000e+00> : vector<8x128xf32>
    %96 = tpu.matmul %93, %6, %cst_24 {dimension_numbers = #tpu.dot_dimension_numbers<[1], [0], [0], [1], [0, 0, 1, 1], [], []>} : vector<8x32xf32>, vector<32x128xf32>, vector<8x128xf32> -> vector<8x128xf32>
    %97 = arith.addf %95, %96 : vector<8x128xf32>
    %98 = math.tanh %97 : vector<8x128xf32>
    %99 = arith.negf %97 : vector<8x128xf32>
    %100 = math.exp %99 : vector<8x128xf32>
    %cst_25 = arith.constant 1.000000e+00 : f32
    %101 = vector.broadcast %cst_25 : f32 to vector<8x128xf32>
    %102 = arith.addf %101, %100 : vector<8x128xf32>
    %103 = arith.divf %101, %102 : vector<8x128xf32>
    %104 = arith.select %12, %98, %103 : vector<8x128xi1>, vector<8x128xf32>
    %105 = vector.extract_strided_slice %104 {offsets = [0, 0], sizes = [8, 32], strides = [1, 1]} : vector<8x128xf32> to vector<8x32xf32>
    %106 = vector.extract_strided_slice %104 {offsets = [0, 32], sizes = [8, 32], strides = [1, 1]} : vector<8x128xf32> to vector<8x32xf32>
    %107 = vector.extract_strided_slice %104 {offsets = [0, 64], sizes = [8, 32], strides = [1, 1]} : vector<8x128xf32> to vector<8x32xf32>
    %108 = vector.extract_strided_slice %104 {offsets = [0, 96], sizes = [8, 32], strides = [1, 1]} : vector<8x128xf32> to vector<8x32xf32>
    %109 = arith.mulf %106, %91 : vector<8x32xf32>
    %110 = arith.mulf %105, %107 : vector<8x32xf32>
    %111 = arith.addf %109, %110 : vector<8x32xf32>
    %112 = math.tanh %111 : vector<8x32xf32>
    %113 = arith.mulf %108, %112 : vector<8x32xf32>
    %c32 = arith.constant 32 : index
    %c0_26 = arith.constant 0 : index
    %114 = vector.load %arg9[%c32, %c0_26] : memref<64x32xf32, #tpu.memory_space<vmem>>, vector<8x32xf32>
    tpu.vector_store %arg9[%c32, %c0_26], %113 {strides = array<i32>} : memref<64x32xf32, #tpu.memory_space<vmem>>, vector<8x32xf32>,
    %115 = vector.extract_strided_slice %5 {offsets = [40, 0], sizes = [8, 128], strides = [1, 1]} : vector<64x128xf32> to vector<8x128xf32>
    %cst_27 = arith.constant dense<0.000000e+00> : vector<8x128xf32>
    %116 = tpu.matmul %113, %6, %cst_27 {dimension_numbers = #tpu.dot_dimension_numbers<[1], [0], [0], [1], [0, 0, 1, 1], [], []>} : vector<8x32xf32>, vector<32x128xf32>, vector<8x128xf32> -> vector<8x128xf32>
    %117 = arith.addf %115, %116 : vector<8x128xf32>
    %118 = math.tanh %117 : vector<8x128xf32>
    %119 = arith.negf %117 : vector<8x128xf32>
    %120 = math.exp %119 : vector<8x128xf32>
    %cst_28 = arith.constant 1.000000e+00 : f32
    %121 = vector.broadcast %cst_28 : f32 to vector<8x128xf32>
    %122 = arith.addf %121, %120 : vector<8x128xf32>
    %123 = arith.divf %121, %122 : vector<8x128xf32>
    %124 = arith.select %12, %118, %123 : vector<8x128xi1>, vector<8x128xf32>
    %125 = vector.extract_strided_slice %124 {offsets = [0, 0], sizes = [8, 32], strides = [1, 1]} : vector<8x128xf32> to vector<8x32xf32>
    %126 = vector.extract_strided_slice %124 {offsets = [0, 32], sizes = [8, 32], strides = [1, 1]} : vector<8x128xf32> to vector<8x32xf32>
    %127 = vector.extract_strided_slice %124 {offsets = [0, 64], sizes = [8, 32], strides = [1, 1]} : vector<8x128xf32> to vector<8x32xf32>
    %128 = vector.extract_strided_slice %124 {offsets = [0, 96], sizes = [8, 32], strides = [1, 1]} : vector<8x128xf32> to vector<8x32xf32>
    %129 = arith.mulf %126, %111 : vector<8x32xf32>
    %130 = arith.mulf %125, %127 : vector<8x32xf32>
    %131 = arith.addf %129, %130 : vector<8x32xf32>
    %132 = math.tanh %131 : vector<8x32xf32>
    %133 = arith.mulf %128, %132 : vector<8x32xf32>
    %c40 = arith.constant 40 : index
    %c0_29 = arith.constant 0 : index
    %134 = vector.load %arg9[%c40, %c0_29] : memref<64x32xf32, #tpu.memory_space<vmem>>, vector<8x32xf32>
    tpu.vector_store %arg9[%c40, %c0_29], %133 {strides = array<i32>} : memref<64x32xf32, #tpu.memory_space<vmem>>, vector<8x32xf32>,
    %135 = vector.extract_strided_slice %5 {offsets = [48, 0], sizes = [8, 128], strides = [1, 1]} : vector<64x128xf32> to vector<8x128xf32>
    %cst_30 = arith.constant dense<0.000000e+00> : vector<8x128xf32>
    %136 = tpu.matmul %133, %6, %cst_30 {dimension_numbers = #tpu.dot_dimension_numbers<[1], [0], [0], [1], [0, 0, 1, 1], [], []>} : vector<8x32xf32>, vector<32x128xf32>, vector<8x128xf32> -> vector<8x128xf32>
    %137 = arith.addf %135, %136 : vector<8x128xf32>
    %138 = math.tanh %137 : vector<8x128xf32>
    %139 = arith.negf %137 : vector<8x128xf32>
    %140 = math.exp %139 : vector<8x128xf32>
    %cst_31 = arith.constant 1.000000e+00 : f32
    %141 = vector.broadcast %cst_31 : f32 to vector<8x128xf32>
    %142 = arith.addf %141, %140 : vector<8x128xf32>
    %143 = arith.divf %141, %142 : vector<8x128xf32>
    %144 = arith.select %12, %138, %143 : vector<8x128xi1>, vector<8x128xf32>
    %145 = vector.extract_strided_slice %144 {offsets = [0, 0], sizes = [8, 32], strides = [1, 1]} : vector<8x128xf32> to vector<8x32xf32>
    %146 = vector.extract_strided_slice %144 {offsets = [0, 32], sizes = [8, 32], strides = [1, 1]} : vector<8x128xf32> to vector<8x32xf32>
    %147 = vector.extract_strided_slice %144 {offsets = [0, 64], sizes = [8, 32], strides = [1, 1]} : vector<8x128xf32> to vector<8x32xf32>
    %148 = vector.extract_strided_slice %144 {offsets = [0, 96], sizes = [8, 32], strides = [1, 1]} : vector<8x128xf32> to vector<8x32xf32>
    %149 = arith.mulf %146, %131 : vector<8x32xf32>
    %150 = arith.mulf %145, %147 : vector<8x32xf32>
    %151 = arith.addf %149, %150 : vector<8x32xf32>
    %152 = math.tanh %151 : vector<8x32xf32>
    %153 = arith.mulf %148, %152 : vector<8x32xf32>
    %c48 = arith.constant 48 : index
    %c0_32 = arith.constant 0 : index
    %154 = vector.load %arg9[%c48, %c0_32] : memref<64x32xf32, #tpu.memory_space<vmem>>, vector<8x32xf32>
    tpu.vector_store %arg9[%c48, %c0_32], %153 {strides = array<i32>} : memref<64x32xf32, #tpu.memory_space<vmem>>, vector<8x32xf32>,
    %155 = vector.extract_strided_slice %5 {offsets = [56, 0], sizes = [8, 128], strides = [1, 1]} : vector<64x128xf32> to vector<8x128xf32>
    %cst_33 = arith.constant dense<0.000000e+00> : vector<8x128xf32>
    %156 = tpu.matmul %153, %6, %cst_33 {dimension_numbers = #tpu.dot_dimension_numbers<[1], [0], [0], [1], [0, 0, 1, 1], [], []>} : vector<8x32xf32>, vector<32x128xf32>, vector<8x128xf32> -> vector<8x128xf32>
    %157 = arith.addf %155, %156 : vector<8x128xf32>
    %158 = math.tanh %157 : vector<8x128xf32>
    %159 = arith.negf %157 : vector<8x128xf32>
    %160 = math.exp %159 : vector<8x128xf32>
    %cst_34 = arith.constant 1.000000e+00 : f32
    %161 = vector.broadcast %cst_34 : f32 to vector<8x128xf32>
    %162 = arith.addf %161, %160 : vector<8x128xf32>
    %163 = arith.divf %161, %162 : vector<8x128xf32>
    %164 = arith.select %12, %158, %163 : vector<8x128xi1>, vector<8x128xf32>
    %165 = vector.extract_strided_slice %164 {offsets = [0, 0], sizes = [8, 32], strides = [1, 1]} : vector<8x128xf32> to vector<8x32xf32>
    %166 = vector.extract_strided_slice %164 {offsets = [0, 32], sizes = [8, 32], strides = [1, 1]} : vector<8x128xf32> to vector<8x32xf32>
    %167 = vector.extract_strided_slice %164 {offsets = [0, 64], sizes = [8, 32], strides = [1, 1]} : vector<8x128xf32> to vector<8x32xf32>
    %168 = vector.extract_strided_slice %164 {offsets = [0, 96], sizes = [8, 32], strides = [1, 1]} : vector<8x128xf32> to vector<8x32xf32>
    %169 = arith.mulf %166, %151 : vector<8x32xf32>
    %170 = arith.mulf %165, %167 : vector<8x32xf32>
    %171 = arith.addf %169, %170 : vector<8x32xf32>
    %172 = math.tanh %171 : vector<8x32xf32>
    %173 = arith.mulf %168, %172 : vector<8x32xf32>
    %c56 = arith.constant 56 : index
    %c0_35 = arith.constant 0 : index
    %174 = vector.load %arg9[%c56, %c0_35] : memref<64x32xf32, #tpu.memory_space<vmem>>, vector<8x32xf32>
    tpu.vector_store %arg9[%c56, %c0_35], %173 {strides = array<i32>} : memref<64x32xf32, #tpu.memory_space<vmem>>, vector<8x32xf32>,
    %c0_36 = arith.constant 0 : index
    %c0_37 = arith.constant 0 : index
    %175 = vector.load %arg9[%c0_36, %c0_37] : memref<64x32xf32, #tpu.memory_space<vmem>>, vector<64x32xf32>
    %c0_38 = arith.constant 0 : index
    %c0_39 = arith.constant 0 : index
    %176 = vector.load %arg4[%c0_38, %c0_39] : memref<32x128xf32, #tpu.memory_space<vmem>>, vector<32x128xf32>
    %cst_40 = arith.constant dense<0.000000e+00> : vector<64x128xf32>
    %177 = tpu.matmul %175, %176, %cst_40 {dimension_numbers = #tpu.dot_dimension_numbers<[1], [0], [0], [1], [0, 0, 1, 1], [], []>} : vector<64x32xf32>, vector<32x128xf32>, vector<64x128xf32> -> vector<64x128xf32>
    %c0_41 = arith.constant 0 : index
    %c0_42 = arith.constant 0 : index
    %178 = vector.load %arg5[%c0_41, %c0_42] : memref<1x128xf32, #tpu.memory_space<vmem>>, vector<1x128xf32>
    %179 = vector.broadcast %178 : vector<1x128xf32> to vector<64x128xf32>
    %180 = arith.addf %177, %179 : vector<64x128xf32>
    %cst_43 = arith.constant 0.000000e+00 : f32
    %181 = vector.broadcast %cst_43 : f32 to vector<64x128xf32>
    %182 = arith.maximumf %180, %181 : vector<64x128xf32>
    %c0_44 = arith.constant 0 : index
    %c0_45 = arith.constant 0 : index
    %183 = vector.load %arg8[%c0_44, %c0_45] : memref<64x128xf32, #tpu.memory_space<vmem>>, vector<64x128xf32>
    tpu.vector_store %arg8[%c0_44, %c0_45], %182 {strides = array<i32>} : memref<64x128xf32, #tpu.memory_space<vmem>>, vector<64x128xf32>,
    return
  }
}

</mosaic_0001>

<bundles_post_ra>
// kernel: mini_lstm_forward.1
= control target key start
LH: loop header
LB: loop body
LE: loop exit
PB: predicated region body
PF: predicated region fallthrough
CT: control target
= control target key end

     0   :  { %vm45_vm0 = vcmask 261120   ;;  %v115_v22 = vlaneseq  ;;  %s865_s30 = smov 32   ;;  %s1166_s1 = inlined_call_operand.vmem [shape: f32[32,128], index: 1, kind: input, shape index: {}]   ;;  %s1167_s2 = inlined_call_operand.vmem [shape: f32[32,128], index: 2, kind: input, shape index: {}]   ;;  %s1168_s0 = inlined_call_operand.vmem [shape: f32[64,32], index: 0, kind: input, shape index: {}]   ;;  %s1169_s3 = inlined_call_operand.vmem [shape: f32[1,128], index: 3, kind: input, shape index: {}]   ;;  %s1170_s6 = inlined_call_operand.vmem [shape: f32[8,32], index: 6, kind: input, shape index: {}]   ;;  %s1171_s7 = inlined_call_operand.vmem [shape: f32[8,32], index: 7, kind: input, shape index: {}]   ;;  %s1172_s4 = inlined_call_operand.vmem [shape: f32[32,128], index: 4, kind: input, shape index: {}]   ;;  %s1173_s5 = inlined_call_operand.vmem [shape: f32[1,128], index: 5, kind: input, shape index: {}]   ;;  %s1174_s8 = inlined_call_operand.vmem [shape: f32[64,128], index: 8, kind: output, shape index: {}]  }
   0x1   :  { %v40_v0 = vld [vmem:[%s1166_s1 + $0x18] sm:$0xff]  ;;  %v39_v1 = vld [vmem:[%s1166_s1 + $0x10] sm:$0xff]  ;;  %v38_v3 = vld [vmem:[%s1166_s1 + $0x8] sm:$0xff] }
   0x2   :  { %788 = vmatpush.msra.mxu2 %v40_v0  ;;  %v920_v2 = vld [vmem:[%s1167_s2 + $0x18] sm:$0xff]  ;;  %82 = vmatpush.msra.mxu0 %v40_v0  ;;  %v930_v4 = vld [vmem:[%s1167_s2 + $0x10] sm:$0xff]  ;;  %v37_v5 = vld [vmem:[%s1166_s1] sm:$0xff]  ;;  %v116_v24 = vand.u32 127, %v115_v22 }
   0x3   :  { %273 = vmatpush.msra.mxu3 %v920_v2  ;;  %339 = vmatpush.msra.mxu1 %v920_v2  ;;  %v35_v6 = vld [vmem:[%s1168_s0 + $0x30] sm:$0xff]  ;;  %v943_v7 = vld [vmem:[%s1167_s2 + $0x8] sm:$0xff]  ;;  %v29_v8 = vld [vmem:[%s1168_s0] sm:$0xff] }
   0x4   :  { %789 = vmatpush.msra.mxu2 %v39_v1  ;;  %83 = vmatpush.msra.mxu0 %v39_v1  ;;  %v954_v9 = vld [vmem:[%s1167_s2] sm:$0xff]  ;;  %v36_v10 = vld [vmem:[%s1168_s0 + $0x38] sm:$0xff]  ;;  %vm117_vm1 = vcmp.ge.s32.totalorder %v116_v24, 64  ;;  %vm118_vm2 = vcmp.lt.s32.totalorder %v116_v24, 96  ;;  %v30_v47 = vld [vmem:[%s1168_s0 + $0x8] sm:$0xff] }
   0x5   :  { %274 = vmatpush.msra.mxu3 %v930_v4  ;;  %340 = vmatpush.msra.mxu1 %v930_v4  ;;  %v120_v11 = vld [vmem:[%s1170_s6] sm:$0xff]  ;;  %vm997_vm4 = vmand %vm117_vm1, %vm118_vm2 }
   0x6   :  { %790 = vmatpush.msra.mxu2 %v38_v3  ;;  %84 = vmatpush.msra.mxu0 %v38_v3  ;;  %v994_v15 = vld [vmem:[%s1169_s3] ss:$0 sm:$0xff]  ;;  %s864_s3 = smov 64  }
   0x7   :  { %275 = vmatpush.msra.mxu3 %v943_v7  ;;  %341 = vmatpush.msra.mxu1 %v943_v7  ;;  %v121_v37 = vld [vmem:[%s1171_s7] sm:$0xff] }
   0x8   :  { %791 = vmatpush.msra.mxu2 %v37_v5  ;;  %85 = vmatpush.msra.mxu0 %v37_v5 }
   0x9   :  { %762 = vmatmul.msk.f32.vlgmr.msra.gmra.mxu2 %vm45_vm0, %v35_v6  ;;  %756 = vmatmul.msk.f32.vlgmr.msra.gmra.mxu0 %vm45_vm0, %v29_v8 }
   0xa   :  { %137 = vmatpush.msrb.mxu2 %v920_v2  ;;  %276 = vmatpush.msra.mxu3 %v954_v9 }
   0xb   :  { %342 = vmatpush.msra.mxu1 %v954_v9 }
   0xc   :  { %471 = vmatpush.msrb.mxu3 %v920_v2  ;;  %138 = vmatpush.msrb.mxu2 %v930_v4 }
   0xd   :  { %537 = vmatpush.msrb.mxu1 %v920_v2 }
   0xe   :  { %472 = vmatpush.msrb.mxu3 %v930_v4  ;;  %139 = vmatpush.msrb.mxu2 %v943_v7 }
   0xf   :  { %538 = vmatpush.msrb.mxu1 %v930_v4 }
  0x10   :  { %473 = vmatpush.msrb.mxu3 %v943_v7  ;;  %140 = vmatpush.msrb.mxu2 %v954_v9 }
  0x11   :  { %539 = vmatpush.msrb.mxu1 %v943_v7  ;;  %763 = vmatmul.msk.f32.gmra.mxu2 %vm45_vm0, %v36_v10 }
  0x12   :  { %474 = vmatpush.msrb.mxu3 %v954_v9  ;;  %207 = vmatpush.msra.mxu2 %v920_v2 }
  0x13   :  { %540 = vmatpush.msrb.mxu1 %v954_v9  ;;  %757 = vmatmul.msk.f32.gmra.mxu0 %vm45_vm0, %v30_v47 }
  0x14   :  { %208 = vmatpush.msra.mxu2 %v930_v4 }
  0x16   :  { %209 = vmatpush.msra.mxu2 %v943_v7 }
  0x18   :  { %210 = vmatpush.msra.mxu2 %v954_v9 }
  0x19   :  { %764 = vmatmul.msk.f32.vlgmr.msrb.gmra.mxu2 %vm45_vm0, %v120_v11 }
  0x1a   :  { %405 = vmatpush.msrb.mxu2 %v920_v2 }
  0x1c   :  { %406 = vmatpush.msrb.mxu2 %v930_v4 }
  0x1e   :  { %407 = vmatpush.msrb.mxu2 %v943_v7 }
  0x20   :  { %408 = vmatpush.msrb.mxu2 %v954_v9 }
  0x86   :  { %v87_v14 = vpop.f32.mrf.mxu0 }
  0x87   :  { %v88_v16 = vadd.f32 %v994_v15, %v87_v14  ;;  %v31_v14 = vld [vmem:[%s1168_s0 + $0x10] sm:$0xff] }
  0x88   :  { %758 = vmatmul.msk.f32.gmra.mxu0 %vm45_vm0, %v31_v14 }
  0x8c   :  { %v987_v12 = vpop.f32.mrf.mxu2 }
  0x90   :  { %v90_v49 = vpop.f32.mrf.mxu0 }
  0x91   :  { %v91_v50 = vadd.f32 %v994_v15, %v90_v49 }
  0x94   :  { %v989_v13 = vpop.f32.mrf.mxu2 }
  0x9c   :  { %v142_v17 = vpop.f32.mrf.mxu2 }
  0x9d   :  { %v145_v18 = vadd.f32 %v142_v17, %v88_v16 }
  0x9f   :  { %v765_v19 = vmul.f32 -1.442695, %v145_v18 }
  0xa1   :  { %800 = vpow2.f32 %v765_v19 }
  0xa7   :  { %v801_v20 = vpop.eup %800 }
  0xa8   :  { %v150_v21 = vadd.f32 1.0, %v801_v20 }
  0xaa   :  { %802 = vrcp.f32 %v150_v21  ;;  %v162_v27 = vand.u32 2147483648, %v150_v21  ;;  %v160_v29 = vand.u32 2147483647, %v150_v21  ;;  %vm156_vm5 = vweird.f32 %v150_v21 }
  0xab   :  { %804 = vtanh.f32 %v145_v18 }
  0xac   :  { %v163_v32 = vor.u32 1.1754944e-38, %v162_v27  ;;  %vm161_vm7 = vcmp.eq.f32.partialorder %v160_v29, 8.507059e+37 }
  0xb0   :  { %v803_v23 = vpop.eup %802 }
  0xb1   :  { %v152_v25 = vmul.f32 %v803_v23, %v150_v21  ;;  %vm157_vm3 = vweird.f32 %v803_v23  ;;  %v805_v34 = vpop.eup %804 }
  0xb2   :  { %vm158_vm6 = vmor %vm156_vm5, %vm157_vm3 }
  0xb3   :  { %v153_v26 = vsub.f32 1.0, %v152_v25 }
  0xb5   :  { %v154_v28 = vmul.f32 %v803_v23, %v153_v26 }
  0xb7   :  { %v155_v31 = vadd.f32 %v803_v23, %v154_v28 }
  0xb9   :  { %v159_v33 = vsel %vm158_vm6, %v803_v23, %v155_v31 }
  0xba   :  { %v164_v35 = vsel %vm161_vm7, %v163_v32, %v159_v33 }
  0xbb   :  { %v166_v36 = vsel %vm997_vm4, %v805_v34, %v164_v35 }
  0xbc   :  { %173 = vrot.lane.b32.xlu0 %v166_v36, %s864_s3 }
  0xc4   :  { %168 = vrot.lane.b32.xlu0 %v121_v37, %s865_s30 }
 0x105   :  { %v93_v17 = vpop.f32.mrf.mxu0 }
 0x106   :  { %v94_v18 = vadd.f32 %v994_v15, %v93_v17 }
 0x12e   :  { %v174_v38 = vpop.permute.xlu0 %173 }
 0x12f   :  { %v176_v39 = vmul.f32 %v174_v38, %v166_v36 }
 0x131   :  { %178 = vrot.lane.b32.xlu1 %v176_v39, %s865_s30 }
 0x136   :  { %v169_v40 = vpop.permute.xlu0 %168 }
 0x137   :  { %v171_v41 = vmul.f32 %v169_v40, %v166_v36 }
 0x1a3   :  { %v179_v42 = vpop.permute.xlu1 %178 }
 0x1a4   :  { %v181_v43 = vadd.f32 %v179_v42, %v171_v41 }
 0x1a6   :  { %806 = vtanh.f32 %v181_v43 }
 0x1ac   :  { %v807_v44 = vpop.eup %806 }
 0x1ad   :  { %184 = vrot.lane.b32.xlu1 %v807_v44, %s864_s3 }
 0x21f   :  { %v185_v45 = vpop.permute.xlu1 %184 }
 0x220   :  { %v187_v46 = vmul.f32 %v185_v45, %v166_v36 }
 0x222   :  { %189 = vrot.lane.b32.xlu2 %v187_v46, %s865_s30 }
 0x27c   :  { %v190_v48 = vpop.permute.xlu2 %189 }
 0x27d   :  { %192 = vst.msk [vmem:[#allocation2] sm:$0xff] %vm45_vm0, %v190_v48  ;;  %766 = vmatmul.msk.f32.vlgmr.msra.gmra.mxu2 %vm45_vm0, %v190_v48 }
 0x27e   :  { %603 = vmatpush.msra.mxu2 %v920_v2 }
 0x280   :  { %604 = vmatpush.msra.mxu2 %v930_v4 }
 0x282   :  { %605 = vmatpush.msra.mxu2 %v943_v7 }
 0x284   :  { %606 = vmatpush.msra.mxu2 %v954_v9 }
 0x300   :  { %v212_v51 = vpop.f32.mrf.mxu2 }
 0x301   :  { %v215_v52 = vadd.f32 %v212_v51, %v91_v50 }
 0x303   :  { %v767_v53 = vmul.f32 -1.442695, %v215_v52 }
 0x305   :  { %808 = vpow2.f32 %v767_v53 }
 0x30b   :  { %v809_v54 = vpop.eup %808 }
 0x30c   :  { %v220_v55 = vadd.f32 1.0, %v809_v54 }
 0x30e   :  { %810 = vrcp.f32 %v220_v55  ;;  %v232_v59 = vand.u32 2147483648, %v220_v55  ;;  %v230_v61 = vand.u32 2147483647, %v220_v55  ;;  %vm226_vm9 = vweird.f32 %v220_v55 }
 0x30f   :  { %812 = vtanh.f32 %v215_v52 }
 0x310   :  { %v233_v63 = vor.u32 1.1754944e-38, %v232_v59  ;;  %vm231_vm11 = vcmp.eq.f32.partialorder %v230_v61, 8.507059e+37 }
 0x314   :  { %v811_v56 = vpop.eup %810 }
 0x315   :  { %v222_v57 = vmul.f32 %v811_v56, %v220_v55  ;;  %vm227_vm8 = vweird.f32 %v811_v56  ;;  %v813_v1 = vpop.eup %812 }
 0x316   :  { %vm228_vm10 = vmor %vm226_vm9, %vm227_vm8 }
 0x317   :  { %v223_v58 = vsub.f32 1.0, %v222_v57 }
 0x319   :  { %v224_v60 = vmul.f32 %v811_v56, %v223_v58 }
 0x31b   :  { %v225_v62 = vadd.f32 %v811_v56, %v224_v60 }
 0x31d   :  { %v229_v0 = vsel %vm228_vm10, %v811_v56, %v225_v62 }
 0x31e   :  { %v234_v2 = vsel %vm231_vm11, %v233_v63, %v229_v0 }
 0x31f   :  { %v236_v3 = vsel %vm997_vm4, %v813_v1, %v234_v2 }
 0x320   :  { %239 = vrot.lane.b32.xlu2 %v236_v3, %s864_s3  ;;  %v237_v6 = vmul.f32 %v236_v3, %v181_v43  ;;  %v32_v43 = vld [vmem:[%s1168_s0 + $0x18] sm:$0xff] }
 0x321   :  { %759 = vmatmul.msk.f32.gmra.mxu0 %vm45_vm0, %v32_v43  ;;  %v666_v43 = vld [vmem:[%s1172_s4 + $0x18] sm:$0xff] }
 0x37a   :  { %v240_v4 = vpop.permute.xlu2 %239 }
 0x37b   :  { %v242_v5 = vmul.f32 %v240_v4, %v236_v3 }
 0x37d   :  { %244 = vrot.lane.b32.xlu0 %v242_v5, %s865_s30 }
 0x39e   :  { %v96_v47 = vpop.f32.mrf.mxu0 }
 0x39f   :  { %v97_v48 = vadd.f32 %v994_v15, %v96_v47  ;;  %v663_v47 = vld [vmem:[%s1172_s4] sm:$0xff] }
 0x3ef   :  { %v245_v7 = vpop.permute.xlu0 %244 }
 0x3f0   :  { %v247_v8 = vadd.f32 %v245_v7, %v237_v6 }
 0x3f2   :  { %814 = vtanh.f32 %v247_v8 }
 0x3f8   :  { %v815_v9 = vpop.eup %814 }
 0x3f9   :  { %250 = vrot.lane.b32.xlu1 %v815_v9, %s864_s3 }
 0x46b   :  { %v251_v10 = vpop.permute.xlu1 %250 }
 0x46c   :  { %v253_v11 = vmul.f32 %v251_v10, %v236_v3  ;;  %v33_v10 = vld [vmem:[%s1168_s0 + $0x20] sm:$0xff] }
 0x46d   :  { %760 = vmatmul.msk.f32.gmra.mxu0 %vm45_vm0, %v33_v10 }
 0x46e   :  { %255 = vrot.lane.b32.xlu2 %v253_v11, %s865_s30 }
 0x4c8   :  { %v256_v16 = vpop.permute.xlu2 %255 }
 0x4c9   :  { %258 = vst.msk [vmem:[#allocation2 + $0x8] sm:$0xff] %vm45_vm0, %v256_v16  ;;  %768 = vmatmul.msk.f32.vlgmr.msra.gmra.mxu3 %vm45_vm0, %v256_v16 }
 0x4ca   :  { %792 = vmatpush.msra.mxu3 %v666_v43 }
 0x4ea   :  { %v99_v14 = vpop.f32.mrf.mxu0 }
 0x4eb   :  { %v100_v16 = vadd.f32 %v994_v15, %v99_v14 }
 0x54c   :  { %v278_v19 = vpop.f32.mrf.mxu3 }
 0x54d   :  { %v281_v20 = vadd.f32 %v278_v19, %v94_v18 }
 0x54f   :  { %v769_v21 = vmul.f32 -1.442695, %v281_v20 }
 0x551   :  { %816 = vpow2.f32 %v769_v21 }
 0x557   :  { %v817_v22 = vpop.eup %816 }
 0x558   :  { %v286_v23 = vadd.f32 1.0, %v817_v22 }
 0x55a   :  { %818 = vrcp.f32 %v286_v23  ;;  %v298_v27 = vand.u32 2147483648, %v286_v23  ;;  %v296_v29 = vand.u32 2147483647, %v286_v23  ;;  %vm292_vm13 = vweird.f32 %v286_v23 }
 0x55b   :  { %820 = vtanh.f32 %v281_v20 }
 0x55c   :  { %v299_v32 = vor.u32 1.1754944e-38, %v298_v27  ;;  %vm297_vm15 = vcmp.eq.f32.partialorder %v296_v29, 8.507059e+37 }
 0x560   :  { %v819_v24 = vpop.eup %818 }
 0x561   :  { %v288_v25 = vmul.f32 %v819_v24, %v286_v23  ;;  %vm293_vm12 = vweird.f32 %v819_v24  ;;  %v821_v34 = vpop.eup %820 }
 0x562   :  { %vm294_vm14 = vmor %vm292_vm13, %vm293_vm12 }
 0x563   :  { %v289_v26 = vsub.f32 1.0, %v288_v25 }
 0x565   :  { %v290_v28 = vmul.f32 %v819_v24, %v289_v26 }
 0x567   :  { %v291_v31 = vadd.f32 %v819_v24, %v290_v28 }
 0x569   :  { %v295_v33 = vsel %vm294_vm14, %v819_v24, %v291_v31 }
 0x56a   :  { %v300_v35 = vsel %vm297_vm15, %v299_v32, %v295_v33 }
 0x56b   :  { %v302_v36 = vsel %vm997_vm4, %v821_v34, %v300_v35 }
 0x56c   :  { %305 = vrot.lane.b32.xlu0 %v302_v36, %s864_s3  ;;  %v303_v39 = vmul.f32 %v302_v36, %v247_v8 }
 0x5de   :  { %v306_v37 = vpop.permute.xlu0 %305 }
 0x5df   :  { %v308_v38 = vmul.f32 %v306_v37, %v302_v36 }
 0x5e1   :  { %310 = vrot.lane.b32.xlu1 %v308_v38, %s865_s30 }
 0x653   :  { %v311_v40 = vpop.permute.xlu1 %310 }
 0x654   :  { %v313_v41 = vadd.f32 %v311_v40, %v303_v39 }
 0x656   :  { %822 = vtanh.f32 %v313_v41 }
 0x65c   :  { %v823_v42 = vpop.eup %822 }
 0x65d   :  { %316 = vrot.lane.b32.xlu2 %v823_v42, %s864_s3 }
 0x6b7   :  { %v317_v44 = vpop.permute.xlu2 %316 }
 0x6b8   :  { %v319_v45 = vmul.f32 %v317_v44, %v302_v36  ;;  %v665_v44 = vld [vmem:[%s1172_s4 + $0x10] sm:$0xff] }
 0x6b9   :  { %793 = vmatpush.msra.mxu3 %v665_v44 }
 0x6ba   :  { %321 = vrot.lane.b32.xlu0 %v319_v45, %s865_s30  ;;  %v34_v45 = vld [vmem:[%s1168_s0 + $0x28] sm:$0xff] }
 0x6bb   :  { %761 = vmatmul.msk.f32.gmra.mxu0 %vm45_vm0, %v34_v45 }
 0x72c   :  { %v322_v46 = vpop.permute.xlu0 %321 }
 0x72d   :  { %324 = vst.msk [vmem:[#allocation2 + $0x10] sm:$0xff] %vm45_vm0, %v322_v46  ;;  %770 = vmatmul.msk.f32.vlgmr.msra.gmra.mxu1 %vm45_vm0, %v322_v46  ;;  %v664_v46 = vld [vmem:[%s1172_s4 + $0x8] sm:$0xff] }
 0x72e   :  { %707 = vmatpush.msra.mxu1 %v666_v43  ;;  %794 = vmatpush.msra.mxu3 %v664_v46 }
 0x730   :  { %708 = vmatpush.msra.mxu1 %v665_v44  ;;  %795 = vmatpush.msra.mxu3 %v663_v47 }
 0x732   :  { %709 = vmatpush.msra.mxu1 %v664_v46 }
 0x734   :  { %710 = vmatpush.msra.mxu1 %v663_v47 }
 0x7aa   :  { %v344_v49 = vpop.f32.mrf.mxu1 }
 0x7ab   :  { %v347_v50 = vadd.f32 %v344_v49, %v97_v48 }
 0x7ad   :  { %v771_v51 = vmul.f32 -1.442695, %v347_v50 }
 0x7af   :  { %824 = vpow2.f32 %v771_v51 }
 0x7b5   :  { %v825_v52 = vpop.eup %824 }
 0x7b6   :  { %v352_v53 = vadd.f32 1.0, %v825_v52 }
 0x7b8   :  { %826 = vrcp.f32 %v352_v53  ;;  %v364_v57 = vand.u32 2147483648, %v352_v53  ;;  %v362_v59 = vand.u32 2147483647, %v352_v53  ;;  %vm358_vm2 = vweird.f32 %v352_v53 }
 0x7b9   :  { %828 = vtanh.f32 %v347_v50  ;;  %v102_v50 = vpop.f32.mrf.mxu0 }
 0x7ba   :  { %v365_v61 = vor.u32 1.1754944e-38, %v364_v57  ;;  %vm363_vm5 = vcmp.eq.f32.partialorder %v362_v59, 8.507059e+37  ;;  %v103_v51 = vadd.f32 %v994_v15, %v102_v50 }
 0x7be   :  { %v827_v54 = vpop.eup %826 }
 0x7bf   :  { %v354_v55 = vmul.f32 %v827_v54, %v352_v53  ;;  %vm359_vm1 = vweird.f32 %v827_v54  ;;  %v829_v63 = vpop.eup %828 }
 0x7c0   :  { %vm360_vm3 = vmor %vm358_vm2, %vm359_vm1 }
 0x7c1   :  { %v355_v56 = vsub.f32 1.0, %v354_v55  ;;  %v1093_v55 = vld [vmem:[%s1173_s5] ss:$0 sm:$0xff] }
 0x7c3   :  { %v356_v58 = vmul.f32 %v827_v54, %v355_v56 }
 0x7c5   :  { %v357_v60 = vadd.f32 %v827_v54, %v356_v58 }
 0x7c7   :  { %v361_v62 = vsel %vm360_vm3, %v827_v54, %v357_v60 }
 0x7c8   :  { %v366_v0 = vsel %vm363_vm5, %v365_v61, %v361_v62 }
 0x7c9   :  { %v368_v1 = vsel %vm997_vm4, %v829_v63, %v366_v0 }
 0x7ca   :  { %371 = vrot.lane.b32.xlu1 %v368_v1, %s864_s3  ;;  %v369_v4 = vmul.f32 %v368_v1, %v313_v41 }
 0x83c   :  { %v372_v2 = vpop.permute.xlu1 %371 }
 0x83d   :  { %v374_v3 = vmul.f32 %v372_v2, %v368_v1 }
 0x83f   :  { %376 = vrot.lane.b32.xlu2 %v374_v3, %s865_s30 }
 0x899   :  { %v377_v5 = vpop.permute.xlu2 %376 }
 0x89a   :  { %v379_v6 = vadd.f32 %v377_v5, %v369_v4 }
 0x89c   :  { %830 = vtanh.f32 %v379_v6 }
 0x8a2   :  { %v831_v7 = vpop.eup %830 }
 0x8a3   :  { %382 = vrot.lane.b32.xlu0 %v831_v7, %s864_s3 }
 0x915   :  { %v383_v8 = vpop.permute.xlu0 %382 }
 0x916   :  { %v385_v9 = vmul.f32 %v383_v8, %v368_v1 }
 0x918   :  { %387 = vrot.lane.b32.xlu1 %v385_v9, %s865_s30 }
 0x98a   :  { %v388_v11 = vpop.permute.xlu1 %387 }
 0x98b   :  { %390 = vst.msk [vmem:[#allocation2 + $0x18] sm:$0xff] %vm45_vm0, %v388_v11  ;;  %772 = vmatmul.msk.f32.vlgmr.msrb.gmra.mxu2 %vm45_vm0, %v388_v11 }
 0xa0e   :  { %v410_v17 = vpop.f32.mrf.mxu2 }
 0xa0f   :  { %v413_v18 = vadd.f32 %v410_v17, %v100_v16 }
 0xa11   :  { %v773_v19 = vmul.f32 -1.442695, %v413_v18 }
 0xa13   :  { %832 = vpow2.f32 %v773_v19 }
 0xa19   :  { %v833_v20 = vpop.eup %832 }
 0xa1a   :  { %v418_v21 = vadd.f32 1.0, %v833_v20 }
 0xa1c   :  { %834 = vrcp.f32 %v418_v21  ;;  %v430_v25 = vand.u32 2147483648, %v418_v21  ;;  %v428_v27 = vand.u32 2147483647, %v418_v21  ;;  %vm424_vm7 = vweird.f32 %v418_v21 }
 0xa1d   :  { %836 = vtanh.f32 %v413_v18 }
 0xa1e   :  { %v431_v29 = vor.u32 1.1754944e-38, %v430_v25  ;;  %vm429_vm9 = vcmp.eq.f32.partialorder %v428_v27, 8.507059e+37  ;;  %v658_v25 = vld [vmem:[#allocation2 + $0x18] sm:$0xff] }
 0xa22   :  { %v835_v22 = vpop.eup %834 }
 0xa23   :  { %v420_v23 = vmul.f32 %v835_v22, %v418_v21  ;;  %vm425_vm6 = vweird.f32 %v835_v22  ;;  %v837_v32 = vpop.eup %836  ;;  %v655_v21 = vld [vmem:[#allocation2] sm:$0xff] }
 0xa24   :  { %vm426_vm8 = vmor %vm424_vm7, %vm425_vm6 }
 0xa25   :  { %v421_v24 = vsub.f32 1.0, %v420_v23  ;;  %v656_v23 = vld [vmem:[#allocation2 + $0x8] sm:$0xff] }
 0xa27   :  { %v422_v26 = vmul.f32 %v835_v22, %v421_v24  ;;  %v657_v24 = vld [vmem:[#allocation2 + $0x10] sm:$0xff] }
 0xa29   :  { %v423_v28 = vadd.f32 %v835_v22, %v422_v26  ;;  %v106_v26 = vadd.f32 %v994_v15, %v987_v12 }
 0xa2b   :  { %v427_v31 = vsel %vm426_vm8, %v835_v22, %v423_v28 }
 0xa2c   :  { %v432_v33 = vsel %vm429_vm9, %v431_v29, %v427_v31 }
 0xa2d   :  { %v434_v34 = vsel %vm997_vm4, %v837_v32, %v432_v33 }
 0xa2e   :  { %437 = vrot.lane.b32.xlu2 %v434_v34, %s864_s3  ;;  %v435_v37 = vmul.f32 %v434_v34, %v379_v6 }
 0xa88   :  { %v438_v35 = vpop.permute.xlu2 %437 }
 0xa89   :  { %v440_v36 = vmul.f32 %v438_v35, %v434_v34 }
 0xa8b   :  { %442 = vrot.lane.b32.xlu0 %v440_v36, %s865_s30 }
 0xafd   :  { %v443_v38 = vpop.permute.xlu0 %442 }
 0xafe   :  { %v1065_v39 = vadd.f32 %v443_v38, %v435_v37 }
 0xb00   :  { %838 = vtanh.f32 %v1065_v39 }
 0xb06   :  { %v839_v40 = vpop.eup %838 }
 0xb07   :  { %448 = vrot.lane.b32.xlu1 %v839_v40, %s864_s3 }
 0xb79   :  { %v449_v41 = vpop.permute.xlu1 %448 }
 0xb7a   :  { %v451_v42 = vmul.f32 %v449_v41, %v434_v34 }
 0xb7c   :  { %453 = vrot.lane.b32.xlu2 %v451_v42, %s865_s30 }
 0xbd6   :  { %v454_v48 = vpop.permute.xlu2 %453 }
 0xbd7   :  { %456 = vst.msk [vmem:[#allocation2 + $0x20] sm:$0xff] %vm45_vm0, %v454_v48  ;;  %774 = vmatmul.msk.f32.vlgmr.msrb.gmra.mxu3 %vm45_vm0, %v454_v48 }
 0xbde   :  { %v659_v49 = vld [vmem:[#allocation2 + $0x20] sm:$0xff] }
 0xbdf   :  { %784 = vmatmul.msk.f32.vlgmr.msra.gmra.mxu3 %vm45_vm0, %v659_v49 }
 0xc5a   :  { %v476_v52 = vpop.f32.mrf.mxu3 }
 0xc5b   :  { %v479_v53 = vadd.f32 %v476_v52, %v103_v51 }
 0xc5d   :  { %v775_v54 = vmul.f32 -1.442695, %v479_v53 }
 0xc5f   :  { %840 = vpow2.f32 %v775_v54 }
 0xc62   :  { %v724_v56 = vpop.f32.mrf.mxu3 }
 0xc63   :  { %v725_v57 = vadd.f32 %v1093_v55, %v724_v56 }
 0xc65   :  { %v841_v58 = vpop.eup %840  ;;  %v740_v59 = vmax.f32 %v725_v57, 0.0 }
 0xc66   :  { %v484_v60 = vadd.f32 1.0, %v841_v58 }
 0xc67   :  { %748 = vst [vmem:[%s1174_s8 + $0x20] sm:$0xff] %v740_v59 }
 0xc68   :  { %842 = vrcp.f32 %v484_v60  ;;  %v496_v0 = vand.u32 2147483648, %v484_v60  ;;  %v494_v2 = vand.u32 2147483647, %v484_v60  ;;  %vm490_vm11 = vweird.f32 %v484_v60 }
 0xc69   :  { %844 = vtanh.f32 %v479_v53 }
 0xc6a   :  { %v497_v4 = vor.u32 1.1754944e-38, %v496_v0  ;;  %vm495_vm13 = vcmp.eq.f32.partialorder %v494_v2, 8.507059e+37 }
 0xc6e   :  { %v843_v61 = vpop.eup %842 }
 0xc6f   :  { %v486_v62 = vmul.f32 %v843_v61, %v484_v60  ;;  %vm491_vm10 = vweird.f32 %v843_v61  ;;  %v845_v6 = vpop.eup %844 }
 0xc70   :  { %vm492_vm12 = vmor %vm490_vm11, %vm491_vm10 }
 0xc71   :  { %v487_v63 = vsub.f32 1.0, %v486_v62 }
 0xc73   :  { %v488_v1 = vmul.f32 %v843_v61, %v487_v63 }
 0xc75   :  { %v489_v3 = vadd.f32 %v843_v61, %v488_v1 }
 0xc77   :  { %v493_v5 = vsel %vm492_vm12, %v843_v61, %v489_v3 }
 0xc78   :  { %v498_v7 = vsel %vm495_vm13, %v497_v4, %v493_v5 }
 0xc79   :  { %v500_v8 = vsel %vm997_vm4, %v845_v6, %v498_v7  ;;  %v109_v6 = vadd.f32 %v994_v15, %v989_v13 }
 0xc7a   :  { %503 = vrot.lane.b32.xlu0 %v500_v8, %s864_s3  ;;  %v501_v11 = vmul.f32 %v500_v8, %v1065_v39 }
 0xcec   :  { %v504_v9 = vpop.permute.xlu0 %503 }
 0xced   :  { %v506_v10 = vmul.f32 %v504_v9, %v500_v8 }
 0xcef   :  { %508 = vrot.lane.b32.xlu1 %v506_v10, %s865_s30 }
 0xd61   :  { %v509_v14 = vpop.permute.xlu1 %508 }
 0xd62   :  { %v1104_v16 = vadd.f32 %v509_v14, %v501_v11 }
 0xd64   :  { %846 = vtanh.f32 %v1104_v16 }
 0xd6a   :  { %v847_v17 = vpop.eup %846 }
 0xd6b   :  { %514 = vrot.lane.b32.xlu2 %v847_v17, %s864_s3 }
 0xdc5   :  { %v515_v18 = vpop.permute.xlu2 %514 }
 0xdc6   :  { %v517_v19 = vmul.f32 %v515_v18, %v500_v8 }
 0xdc8   :  { %519 = vrot.lane.b32.xlu0 %v517_v19, %s865_s30 }
 0xe3a   :  { %v520_v20 = vpop.permute.xlu0 %519 }
 0xe3b   :  { %522 = vst.msk [vmem:[#allocation2 + $0x28] sm:$0xff] %vm45_vm0, %v520_v20  ;;  %776 = vmatmul.msk.f32.vlgmr.msrb.gmra.mxu1 %vm45_vm0, %v520_v20 }
 0xe42   :  { %v660_v22 = vld [vmem:[#allocation2 + $0x28] sm:$0xff] }
 0xe43   :  { %780 = vmatmul.msk.f32.vlgmr.msra.gmra.mxu1 %vm45_vm0, %v655_v21  ;;  %785 = vmatmul.msk.f32.gmra.mxu3 %vm45_vm0, %v660_v22 }
 0xe4b   :  { %781 = vmatmul.msk.f32.gmra.mxu1 %vm45_vm0, %v656_v23 }
 0xe53   :  { %782 = vmatmul.msk.f32.gmra.mxu1 %vm45_vm0, %v657_v24 }
 0xe5b   :  { %783 = vmatmul.msk.f32.gmra.mxu1 %vm45_vm0, %v658_v25 }
 0xeb8   :  { %v542_v27 = vpop.f32.mrf.mxu1 }
 0xeb9   :  { %v545_v28 = vadd.f32 %v542_v27, %v106_v26 }
 0xebb   :  { %v777_v29 = vmul.f32 -1.442695, %v545_v28 }
 0xebd   :  { %848 = vpow2.f32 %v777_v29 }
 0xec0   :  { %v712_v31 = vpop.f32.mrf.mxu1 }
 0xec1   :  { %v713_v32 = vadd.f32 %v1093_v55, %v712_v31 }
 0xec3   :  { %v849_v33 = vpop.eup %848  ;;  %v736_v34 = vmax.f32 %v713_v32, 0.0 }
 0xec4   :  { %v550_v35 = vadd.f32 1.0, %v849_v33 }
 0xec5   :  { %744 = vst [vmem:[%s1174_s8] sm:$0xff] %v736_v34 }
 0xec6   :  { %850 = vrcp.f32 %v550_v35  ;;  %v727_v36 = vpop.f32.mrf.mxu3  ;;  %v562_v45 = vand.u32 2147483648, %v550_v35  ;;  %v560_v48 = vand.u32 2147483647, %v550_v35  ;;  %vm556_vm15 = vweird.f32 %v550_v35 }
 0xec7   :  { %v728_v37 = vadd.f32 %v1093_v55, %v727_v36  ;;  %852 = vtanh.f32 %v545_v28 }
 0xec8   :  { %v715_v38 = vpop.f32.mrf.mxu1  ;;  %v563_v51 = vor.u32 1.1754944e-38, %v562_v45  ;;  %vm561_vm2 = vcmp.eq.f32.partialorder %v560_v48, 8.507059e+37 }
 0xec9   :  { %v741_v12 = vmax.f32 %v728_v37, 0.0  ;;  %v716_v39 = vadd.f32 %v1093_v55, %v715_v38 }
 0xecb   :  { %749 = vst [vmem:[%s1174_s8 + $0x28] sm:$0xff] %v741_v12  ;;  %v737_v40 = vmax.f32 %v716_v39, 0.0 }
 0xecc   :  { %v851_v41 = vpop.eup %850 }
 0xecd   :  { %745 = vst [vmem:[%s1174_s8 + $0x8] sm:$0xff] %v737_v40  ;;  %v552_v42 = vmul.f32 %v851_v41, %v550_v35  ;;  %vm557_vm14 = vweird.f32 %v851_v41  ;;  %v853_v53 = vpop.eup %852 }
 0xece   :  { %vm558_vm1 = vmor %vm556_vm15, %vm557_vm14 }
 0xecf   :  { %v553_v43 = vsub.f32 1.0, %v552_v42 }
 0xed0   :  { %v718_v44 = vpop.f32.mrf.mxu1 }
 0xed1   :  { %v719_v46 = vadd.f32 %v1093_v55, %v718_v44  ;;  %v554_v47 = vmul.f32 %v851_v41, %v553_v43 }
 0xed3   :  { %v738_v49 = vmax.f32 %v719_v46, 0.0  ;;  %v555_v50 = vadd.f32 %v851_v41, %v554_v47 }
 0xed5   :  { %746 = vst [vmem:[%s1174_s8 + $0x10] sm:$0xff] %v738_v49  ;;  %v559_v52 = vsel %vm558_vm1, %v851_v41, %v555_v50 }
 0xed6   :  { %v564_v54 = vsel %vm561_vm2, %v563_v51, %v559_v52 }
 0xed7   :  { %v566_v56 = vsel %vm997_vm4, %v853_v53, %v564_v54 }
 0xed8   :  { %569 = vrot.lane.b32.xlu1 %v566_v56, %s864_s3  ;;  %v721_v57 = vpop.f32.mrf.mxu1  ;;  %v567_v62 = vmul.f32 %v566_v56, %v1104_v16 }
 0xed9   :  { %v722_v58 = vadd.f32 %v1093_v55, %v721_v57 }
 0xedb   :  { %v739_v59 = vmax.f32 %v722_v58, 0.0 }
 0xedd   :  { %747 = vst [vmem:[%s1174_s8 + $0x18] sm:$0xff] %v739_v59 }
 0xf4a   :  { %v570_v60 = vpop.permute.xlu1 %569 }
 0xf4b   :  { %v572_v61 = vmul.f32 %v570_v60, %v566_v56 }
 0xf4d   :  { %574 = vrot.lane.b32.xlu2 %v572_v61, %s865_s30 }
 0xfa7   :  { %v575_v63 = vpop.permute.xlu2 %574 }
 0xfa8   :  { %v577_v0 = vadd.f32 %v575_v63, %v567_v62 }
 0xfaa   :  { %854 = vtanh.f32 %v577_v0 }
 0xfb0   :  { %v855_v1 = vpop.eup %854 }
 0xfb1   :  { %580 = vrot.lane.b32.xlu0 %v855_v1, %s864_s3 }
0x1023   :  { %v581_v2 = vpop.permute.xlu0 %580 }
0x1024   :  { %v583_v3 = vmul.f32 %v581_v2, %v566_v56 }
0x1026   :  { %585 = vrot.lane.b32.xlu1 %v583_v3, %s865_s30 }
0x1098   :  { %v586_v4 = vpop.permute.xlu1 %585 }
0x1099   :  { %588 = vst.msk [vmem:[#allocation2 + $0x30] sm:$0xff] %vm45_vm0, %v586_v4  ;;  %778 = vmatmul.msk.f32.vlgmr.msra.gmra.mxu2 %vm45_vm0, %v586_v4 }
0x10a0   :  { %v661_v5 = vld [vmem:[#allocation2 + $0x30] sm:$0xff] }
0x10a1   :  { %786 = vmatmul.msk.f32.gmra.mxu3 %vm45_vm0, %v661_v5 }
0x111c   :  { %v608_v7 = vpop.f32.mrf.mxu2 }
0x111d   :  { %v611_v8 = vadd.f32 %v608_v7, %v109_v6 }
0x111f   :  { %v779_v9 = vmul.f32 -1.442695, %v611_v8 }
0x1121   :  { %856 = vpow2.f32 %v779_v9 }
0x1124   :  { %v730_v10 = vpop.f32.mrf.mxu3 }
0x1125   :  { %v731_v11 = vadd.f32 %v1093_v55, %v730_v10 }
0x1127   :  { %v857_v14 = vpop.eup %856  ;;  %v742_v16 = vmax.f32 %v731_v11, 0.0 }
0x1128   :  { %v616_v17 = vadd.f32 1.0, %v857_v14 }
0x1129   :  { %750 = vst [vmem:[%s1174_s8 + $0x30] sm:$0xff] %v742_v16 }
0x112a   :  { %858 = vrcp.f32 %v616_v17  ;;  %v628_v13 = vand.u32 2147483648, %v616_v17  ;;  %v626_v21 = vand.u32 2147483647, %v616_v17  ;;  %vm622_vm5 = vweird.f32 %v616_v17 }
0x112b   :  { %860 = vtanh.f32 %v611_v8 }
0x112c   :  { %v629_v23 = vor.u32 1.1754944e-38, %v628_v13  ;;  %vm627_vm7 = vcmp.eq.f32.partialorder %v626_v21, 8.507059e+37 }
0x1130   :  { %v859_v18 = vpop.eup %858 }
0x1131   :  { %v618_v19 = vmul.f32 %v859_v18, %v616_v17  ;;  %vm623_vm3 = vweird.f32 %v859_v18  ;;  %v861_v25 = vpop.eup %860 }
0x1132   :  { %vm624_vm6 = vmor %vm622_vm5, %vm623_vm3 }
0x1133   :  { %v619_v20 = vsub.f32 1.0, %v618_v19 }
0x1135   :  { %v620_v15 = vmul.f32 %v859_v18, %v619_v20 }
0x1137   :  { %v621_v22 = vadd.f32 %v859_v18, %v620_v15 }
0x1139   :  { %v625_v24 = vsel %vm624_vm6, %v859_v18, %v621_v22 }
0x113a   :  { %v630_v26 = vsel %vm627_vm7, %v629_v23, %v625_v24 }
0x113b   :  { %v632_v27 = vsel %vm997_vm4, %v861_v25, %v630_v26 }
0x113c   :  { %635 = vrot.lane.b32.xlu2 %v632_v27, %s864_s3  ;;  %v633_v31 = vmul.f32 %v632_v27, %v577_v0 }
0x1196   :  { %v636_v28 = vpop.permute.xlu2 %635 }
0x1197   :  { %v638_v29 = vmul.f32 %v636_v28, %v632_v27 }
0x1199   :  { %640 = vrot.lane.b32.xlu0 %v638_v29, %s865_s30 }
0x120b   :  { %v641_v32 = vpop.permute.xlu0 %640 }
0x120c   :  { %v643_v33 = vadd.f32 %v641_v32, %v633_v31 }
0x120e   :  { %862 = vtanh.f32 %v643_v33 }
0x1214   :  { %v863_v34 = vpop.eup %862 }
0x1215   :  { %646 = vrot.lane.b32.xlu1 %v863_v34, %s864_s3 }
0x1287   :  { %v647_v35 = vpop.permute.xlu1 %646 }
0x1288   :  { %v649_v36 = vmul.f32 %v647_v35, %v632_v27 }
0x128a   :  { %651 = vrot.lane.b32.xlu2 %v649_v36, %s865_s30 }
0x12e4   :  { %v652_v37 = vpop.permute.xlu2 %651 }
0x12e5   :  { %654 = vst.msk [vmem:[#allocation2 + $0x38] sm:$0xff] %vm45_vm0, %v652_v37 }
0x12ec   :  { %v662_v30 = vld [vmem:[#allocation2 + $0x38] sm:$0xff] }
0x12ed   :  { %787 = vmatmul.msk.f32.gmra.mxu3 %vm45_vm0, %v662_v30 }
0x1370   :  { %v733_v38 = vpop.f32.mrf.mxu3 }
0x1371   :  { %v734_v12 = vadd.f32 %v1093_v55, %v733_v38 }
0x1373   :  { %v743_v39 = vmax.f32 %v734_v12, 0.0 }
0x1375   :  { %751 = vst [vmem:[%s1174_s8 + $0x38] sm:$0xff] %v743_v39 }

</bundles_post_ra>
